<compile_context>
chip_gen: v7x
topology: tpu7x:2x2x1
jax: 0.10.0
libtpu: 0.0.40
codegen_flags: <defaults>
</compile_context>

<pallas_src>
import jax
import jax.numpy as jnp
from jax import lax
from jax.experimental import pallas as pl
from jax.experimental.pallas import tpu as pltpu

LANE = 128  # TPU vreg lane width


def _sphere_abs_packed_kernel(seg_ref, x_ref, xopt_ref, c1_ref, c2_ref, o_ref):
    """Lane-packed path: one (tile_r, 128) block per step, segmented row-sum on MXU."""
    x = x_ref[...].astype(jnp.float32)
    xo = xopt_ref[...].astype(jnp.float32)
    c1 = c1_ref[...].astype(jnp.float32)
    c2 = c2_ref[...].astype(jnp.float32)

    abs_z = jnp.abs(x - xo)
    scaled = abs_z * (abs_z * c1 + c2)             # z^2*c1 + |z|*c2, one fewer vmul

    # seg_ref[l, s] = 1 iff lane l belongs to packed segment s; exact f32 reduction.
    o_ref[...] = jnp.dot(scaled, seg_ref[...],
                         preferred_element_type=jnp.float32,
                         precision=lax.Precision.HIGHEST)


def _make_row_sum_kernel(D, tile_k, n_k):
    """pack == 1 path: (tile_r, tile_k) blocks, K-accumulated row sum (exact f32)."""
    ragged = (D % tile_k) != 0

    def kernel(x_ref, xopt_ref, c1_ref, c2_ref, o_ref):
        k = pl.program_id(1)

        @pl.when(k == 0)
        def _init():
            o_ref[...] = jnp.zeros_like(o_ref)

        x = x_ref[...].astype(jnp.float32)
        xo = xopt_ref[...].astype(jnp.float32)
        c1 = c1_ref[...].astype(jnp.float32)
        c2 = c2_ref[...].astype(jnp.float32)

        abs_z = jnp.abs(x - xo)
        scaled = abs_z * (abs_z * c1 + c2)

        if ragged:
            # Last K block overruns D: mask the out-of-bounds (garbage) columns.
            col = k * tile_k + lax.broadcasted_iota(jnp.int32, scaled.shape, 1)
            scaled = jnp.where(col < D, scaled, 0.0)

        o_ref[...] += jnp.sum(scaled, axis=-1, keepdims=True)

    return kernel


def sphere_abs(x, x_opt, coefs1, coefs2, *,
               input_vmem_budget_bytes=24 * 1024 * 1024,
               vmem_limit_bytes=48 * 1024 * 1024,
               max_tile_k=2048):
    assert x.ndim == 2
    assert x.shape == x_opt.shape == coefs1.shape == coefs2.shape
    B, D = x.shape
    arrays = (x, x_opt, coefs1, coefs2)
    itemsize = jnp.dtype(x.dtype).itemsize
    align = max(8, 32 // itemsize)    # 8 for f32, 16 for bf16: clean sublane packing

    # Lane packing for narrow feature dims: view (B, D) as (B/p, p*D = 128) so every
    # vreg is fully occupied.  Only done when it needs no padding copy (B % p == 0);
    # otherwise fall back to pack=1 rather than jnp.pad-ing all inputs through HBM.
    pack = 1
    if D < LANE and LANE % D == 0 and B % (LANE // D) == 0:
        pack = LANE // D

    if pack > 1:
        R, L = B // pack, pack * D
        arrays = tuple(a.reshape(R, L) for a in arrays)  # row-major: no data movement
        tile_cols, n_k = L, 1
    else:
        R, L = B, D
        if D <= max_tile_k:
            tile_cols, n_k = D, 1                        # full row in one block
        else:
            tile_cols = max((max_tile_k // LANE) * LANE, LANE)  # K tiles: lane multiple
            n_k = pl.cdiv(D, tile_cols)

    out_cols = pack

    # VMEM per row of one batch tile: 4 inputs x 2 pipeline buffers, plus ~2 f32-sized
    # temporaries (upcast / `scaled`) the compiler may materialize, plus the
    # double-buffered f32 output row.
    per_row_bytes = tile_cols * (itemsize * 4 * 2 + 4 * 2) + out_cols * 4 * 2
    tile_r = (input_vmem_budget_bytes // per_row_bytes) // align * align
    tile_r = max(tile_r, align)
    if tile_r >= R:
        if R > align:
            # Keep >= 2 batch blocks so both TensorCores participate on v7x.
            tile_r = ((pl.cdiv(R, 2) + align - 1) // align) * align
            if tile_r >= R:
                tile_r = align
        else:
            tile_r = R
    n_r = pl.cdiv(R, tile_r)

    compiler_params = pltpu.CompilerParams(
        dimension_semantics=("parallel",) if pack > 1 else ("parallel", "arbitrary"),
        vmem_limit_bytes=vmem_limit_bytes,
    )

    if pack > 1:
        # Segment selector built once in the wrapper and kept resident in VMEM
        # (same block index every step -> no per-step DMA / iota work).
        seg_mat = (jnp.arange(L)[:, None] // D == jnp.arange(pack)[None, :]
                   ).astype(jnp.float32)
        grid = (n_r,)
        in_specs = [pl.BlockSpec((L, pack), lambda i: (0, 0))] + \
                   [pl.BlockSpec((tile_r, L), lambda i: (i, 0))] * 4
        out_specs = pl.BlockSpec((tile_r, pack), lambda i: (i, 0))
        kernel = _sphere_abs_packed_kernel
        operands = (seg_mat,) + arrays
    else:
        grid = (n_r, n_k)
        in_specs = [pl.BlockSpec((tile_r, tile_cols), lambda i, k: (i, k))] * 4
        out_specs = pl.BlockSpec((tile_r, 1), lambda i, k: (i, 0))
        kernel = _make_row_sum_kernel(D, tile_cols, n_k)
        operands = arrays

    out = pl.pallas_call(
        kernel,
        out_shape=jax.ShapeDtypeStruct((R, out_cols), jnp.float32),
        grid=grid,
        in_specs=in_specs,
        out_specs=out_specs,
        compiler_params=compiler_params,
    )(*operands)

    if pack > 1:
        # Row-major flatten restores the original batch order exactly (no padding).
        return out.reshape(B, 1)
    return out


def sphere_abs_ref(x, x_opt, coefs1, coefs2):
    z = x - x_opt
    return jnp.sum(z * z * coefs1 + jnp.abs(z) * coefs2, axis=1, keepdims=True)


if __name__ == "__main__":
    # Stand-ins for config['lower'] / config['upper'] used by the module's generate().
    lower, upper = -5.0, 5.0

    def make_inputs(key, batch, dim):
        kx, kopt, k1, k2 = jax.random.split(key, 4)
        x = jax.random.uniform(kx, (batch, dim), jnp.float32, minval=lower, maxval=upper)
        x_opt = jax.random.uniform(kopt, (batch, dim), jnp.float32, minval=lower, maxval=upper)
        coefs1 = jax.random.uniform(k1, (batch, dim), jnp.float32) * 10.0
        coefs2 = jax.random.uniform(k2, (batch, dim), jnp.float32) * 10.0
        return x, x_opt, coefs1, coefs2

    keys = jax.random.split(jax.random.PRNGKey(0), 4)
    RTOL, ATOL = 1e-4, 1e-2

    # 1) narrow feature dim: lane-packed path (pack=4), >=2 batch blocks.
    args = make_inputs(keys[0], 64, 32)
    out = jax.block_until_ready(sphere_abs(*args))
    ref = sphere_abs_ref(*args)
    assert out.shape == (64, 1), out.shape
    assert jnp.allclose(out, ref, rtol=RTOL, atol=ATOL)

    # 2) wide feature dim, single K block (plain path).
    args = make_inputs(keys[1], 8, 160)
    out = jax.block_until_ready(sphere_abs(*args))
    ref = sphere_abs_ref(*args)
    assert out.shape == (8, 1), out.shape
    assert jnp.allclose(out, ref, rtol=RTOL, atol=ATOL)

    # 3) forced feature-axis (K) tiling with a ragged masked tail (160 = 128 + 32).
    args = make_inputs(keys[2], 16, 160)
    out = jax.block_until_ready(sphere_abs(*args, max_tile_k=128))
    ref = sphere_abs_ref(*args)
    assert out.shape == (16, 1), out.shape
    assert jnp.allclose(out, ref, rtol=RTOL, atol=ATOL)

    # 4) batch not divisible by the lane pack -> pack=1 fallback (no padding copy).
    args = make_inputs(keys[3], 10, 32)
    out = jax.block_until_ready(sphere_abs(*args))
    ref = sphere_abs_ref(*args)
    assert out.shape == (10, 1), out.shape
    assert jnp.allclose(out, ref, rtol=RTOL, atol=ATOL)

    print("KERNEL_OK")
</pallas_src>

<mosaic_0001>
module attributes {stable_mosaic.version = 11 : i64} {
  func.func @_sphere_abs_packed_kernel(%arg0: i32, %arg1: memref<128x4xf32, #tpu.memory_space<vmem>>, %arg2: memref<8x128xf32, #tpu.memory_space<vmem>>, %arg3: memref<8x128xf32, #tpu.memory_space<vmem>>, %arg4: memref<8x128xf32, #tpu.memory_space<vmem>>, %arg5: memref<8x128xf32, #tpu.memory_space<vmem>>, %arg6: memref<8x4xf32, #tpu.memory_space<vmem>>) attributes {dimension_semantics = [#tpu.dimension_semantics<parallel>], iteration_bounds = array<i64: 2>, scalar_prefetch = 0 : i64, scratch_operands = 0 : i64, tpu.core_type = #tpu.core_type<tc>, window_params = [{pipeline_mode = #tpu.pipeline_mode<synchronous>, transform_indices = @transform_0, window_bounds = array<i64: 128, 4>}, {transform_indices = @transform_1, window_bounds = array<i64: 8, 128>}, {transform_indices = @transform_2, window_bounds = array<i64: 8, 128>}, {transform_indices = @transform_3, window_bounds = array<i64: 8, 128>}, {transform_indices = @transform_4, window_bounds = array<i64: 8, 128>}, {transform_indices = @transform_5, window_bounds = array<i64: 8, 4>}]} {
    %c0 = arith.constant 0 : index
    %c0_0 = arith.constant 0 : index
    %0 = vector.load %arg2[%c0, %c0_0] : memref<8x128xf32, #tpu.memory_space<vmem>>, vector<8x128xf32>
    %c0_1 = arith.constant 0 : index
    %c0_2 = arith.constant 0 : index
    %1 = vector.load %arg3[%c0_1, %c0_2] : memref<8x128xf32, #tpu.memory_space<vmem>>, vector<8x128xf32>
    %c0_3 = arith.constant 0 : index
    %c0_4 = arith.constant 0 : index
    %2 = vector.load %arg4[%c0_3, %c0_4] : memref<8x128xf32, #tpu.memory_space<vmem>>, vector<8x128xf32>
    %c0_5 = arith.constant 0 : index
    %c0_6 = arith.constant 0 : index
    %3 = vector.load %arg5[%c0_5, %c0_6] : memref<8x128xf32, #tpu.memory_space<vmem>>, vector<8x128xf32>
    %4 = arith.subf %0, %1 : vector<8x128xf32>
    %5 = math.absf %4 : vector<8x128xf32>
    %6 = arith.mulf %5, %2 : vector<8x128xf32>
    %7 = arith.addf %6, %3 : vector<8x128xf32>
    %8 = arith.mulf %5, %7 : vector<8x128xf32>
    %c0_7 = arith.constant 0 : index
    %c0_8 = arith.constant 0 : index
    %9 = vector.load %arg1[%c0_7, %c0_8] : memref<128x4xf32, #tpu.memory_space<vmem>>, vector<128x4xf32>
    %cst = arith.constant dense<0.000000e+00> : vector<8x4xf32>
    %10 = tpu.matmul %8, %9, %cst {dimension_numbers = #tpu.dot_dimension_numbers<[1], [0], [0], [1], [0, 0, 1, 1], [], []>, precision = #tpu.contract_precision<fp32>} : vector<8x128xf32>, vector<128x4xf32>, vector<8x4xf32> -> vector<8x4xf32>
    %c0_9 = arith.constant 0 : index
    %c0_10 = arith.constant 0 : index
    %11 = vector.load %arg6[%c0_9, %c0_10] : memref<8x4xf32, #tpu.memory_space<vmem>>, vector<8x4xf32>
    tpu.vector_store %arg6[%c0_9, %c0_10], %10 {strides = array<i32>} : memref<8x4xf32, #tpu.memory_space<vmem>>, vector<8x4xf32>,
    return
  }
  func.func @transform_0(%arg0: i32) -> (i32, i32) {
    %c0_i32 = arith.constant 0 : i32
    %c0_i32_0 = arith.constant 0 : i32
    %c0_i32_1 = arith.constant 0 : i32
    return %c0_i32, %c0_i32_0 : i32, i32
  }
  func.func @transform_1(%arg0: i32) -> (i32, i32) {
    %c0_i32 = arith.constant 0 : i32
    %c0_i32_0 = arith.constant 0 : i32
    return %arg0, %c0_i32 : i32, i32
  }
  func.func @transform_2(%arg0: i32) -> (i32, i32) {
    %c0_i32 = arith.constant 0 : i32
    %c0_i32_0 = arith.constant 0 : i32
    return %arg0, %c0_i32 : i32, i32
  }
  func.func @transform_3(%arg0: i32) -> (i32, i32) {
    %c0_i32 = arith.constant 0 : i32
    %c0_i32_0 = arith.constant 0 : i32
    return %arg0, %c0_i32 : i32, i32
  }
  func.func @transform_4(%arg0: i32) -> (i32, i32) {
    %c0_i32 = arith.constant 0 : i32
    %c0_i32_0 = arith.constant 0 : i32
    return %arg0, %c0_i32 : i32, i32
  }
  func.func @transform_5(%arg0: i32) -> (i32, i32) {
    %c0_i32 = arith.constant 0 : i32
    %c0_i32_0 = arith.constant 0 : i32
    return %arg0, %c0_i32 : i32, i32
  }
}

</mosaic_0001>

<bundles_post_ra>
// kernel: tpu_custom_call.1
= control target key start
LH: loop header
LB: loop body
LE: loop exit
PB: predicated region body
PF: predicated region fallthrough
CT: control target
= control target key end

     0   :  { %s1557_s18 = smov 0   ;;  %s1941_s0 = inlined_call_operand.vmem [shape: f32[128,4], index: 0, kind: input, shape index: {}]   ;;  %s1942_s1 = inlined_call_operand.vmem [shape: f32[16,128], index: 1, kind: input, shape index: {}]   ;;  %s1943_s2 = inlined_call_operand.vmem [shape: f32[16,128], index: 2, kind: input, shape index: {}]   ;;  %s1944_s3 = inlined_call_operand.vmem [shape: f32[16,128], index: 3, kind: input, shape index: {}]   ;;  %s1945_s4 = inlined_call_operand.vmem [shape: f32[16,128], index: 4, kind: input, shape index: {}]   ;;  %s1946_s5 = inlined_call_operand.vmem [shape: f32[16,4], index: 5, kind: output, shape index: {}]  }
   0x1 LB: > { %s1028_s19 = sadd.s32 4294967295, %s1522_s18   ;;  %p1032_p0 = scmp.ge.s32.totalorder %s1522_s18, 1  ;;  %s1522_s18 = sphi %s1557_s18, %s15_s18  }
   0x2   : > { %p213_p1 = scmp.lt.s32.totalorder %s1522_s18, 3 }
   0x4   : > { %p214_p2 = pnand %p1032_p0, %p213_p1 }
   0x5   : > { %v280_v0 = vld [vmem:[%s1941_s0] sm:$0xff] (!%p214_p2)  ;;  %v281_v1 = vld [vmem:[%s1941_s0 + $0x8] sm:$0xff] (!%p214_p2)  ;;  %v1574_v2 = vld [vmem:[%s1941_s0 + $0x10] sm:$0xff] (!%p214_p2)  ;;  %v1524_v3 = vmov (!%p214_p2), 0.0|0.0   ;;  %vm1525_vm0 = vmmov (!%p214_p2), 0   ;;  %v1526_v11 = vmov (!%p214_p2), 0.0  }
   0x6   : > { %217 = sbr.rel (%p214_p2) target bundleno = 320 (0x140), region = 40  ;;  %1352 = vmatprep.subr.bf16.mxu1 (!%p214_p2), %v1524_v3  ;;  %1424 = vmatprep.subr.bf16.mxu0 (!%p214_p2), %v1524_v3  ;;  %v297_v4 = vand.u32 (!%p214_p2), 4294901760, %v280_v0  ;;  %v300_v5 = vand.u32 (!%p214_p2), 4294901760, %v281_v1  ;;  %v1581_v6 = vld [vmem:[%s1941_s0 + $0x18] sm:$0xff] (!%p214_p2)  ;;  %v303_v7 = vand.u32 (!%p214_p2), 4294901760, %v1574_v2  ;;  %v1588_v9 = vld [vmem:[%s1941_s0 + $0x20] sm:$0xff] (!%p214_p2) }
   0x7   : > { %v306_v8 = vand.u32 (!%p214_p2), 4294901760, %v1581_v6  ;;  %v1593_v10 = vld [vmem:[%s1941_s0 + $0x28] sm:$0xff] (!%p214_p2)  ;;  %1174 = vmatprep.mubr.msk.f32.mxu1 (!%p214_p2), %vm1525_vm0, %v1526_v11  ;;  %1279 = vmatprep.mubr.msk.f32.mxu0 (!%p214_p2), %vm1525_vm0, %v1526_v11  ;;  %p251_p3 = scmp.lt.s32.totalorder (!%p214_p2), %s1028_s19, 1  ;;  %v309_v14 = vand.u32 (!%p214_p2), 4294901760, %v1588_v9  ;;  %v1616_v16 = vld [vmem:[%s1941_s0 + $0x30] sm:$0xff] (!%p214_p2)  ;;  %v1621_v17 = vld [vmem:[%s1941_s0 + $0x38] sm:$0xff] (!%p214_p2) }
   0x8   : > { %v1599_v12 = vpack.c.bf16 (!%p214_p2), %v300_v5, %v297_v4  ;;  %v312_v15 = vand.u32 (!%p214_p2), 4294901760, %v1593_v10  ;;  %v315_v19 = vand.u32 (!%p214_p2), 4294901760, %v1616_v16  ;;  %v318_v20 = vand.u32 (!%p214_p2), 4294901760, %v1621_v17  ;;  %v1652_v23 = vld [vmem:[%s1941_s0 + $0x40] sm:$0xff] (!%p214_p2)  ;;  %v1657_v24 = vld [vmem:[%s1941_s0 + $0x48] sm:$0xff] (!%p214_p2)  ;;  %v1678_v32 = vld [vmem:[%s1941_s0 + $0x50] sm:$0xff] (!%p214_p2) }
   0x9   : > { %v1607_v13 = vpack.c.bf16 (!%p214_p2), %v306_v8, %v303_v7  ;;  %v321_v29 = vand.u32 (!%p214_p2), 4294901760, %v1652_v23  ;;  %v324_v30 = vand.u32 (!%p214_p2), 4294901760, %v1657_v24  ;;  %v1683_v33 = vld [vmem:[%s1941_s0 + $0x58] sm:$0xff] (!%p214_p2)  ;;  %v1685_v35 = vsub.f32 (!%p214_p2), %v280_v0, %v297_v4  ;;  %v1702_v41 = vld [vmem:[%s1941_s0 + $0x60] sm:$0xff] (!%p214_p2)  ;;  %v1709_v42 = vld [vmem:[%s1941_s0 + $0x68] sm:$0xff] (!%p214_p2) }
   0xa   : > { %1354 = vmatpush3.bf16.msra.mxu1 (!%p214_p2), %v1599_v12  ;;  %1426 = vmatpush3.bf16.msra.mxu0 (!%p214_p2), %v1599_v12  ;;  %v1639_v18 = vpack.c.bf16 (!%p214_p2), %v312_v15, %v309_v14  ;;  %v1669_v28 = vpack.c.bf16 (!%p214_p2), %v318_v20, %v315_v19  ;;  %v1687_v37 = vsub.f32 (!%p214_p2), %v281_v1, %v300_v5  ;;  %v327_v39 = vand.u32 (!%p214_p2), 4294901760, %v1678_v32  ;;  %v1736_v50 = vld [vmem:[%s1941_s0 + $0x70] sm:$0xff] (!%p214_p2)  ;;  %v1741_v51 = vld [vmem:[%s1941_s0 + $0x78] sm:$0xff] (!%p214_p2) }
   0xb   : > { %1355 = vmatprep.subr.bf16.mxu1 (!%p214_p2), %v1524_v3  ;;  %1427 = vmatprep.subr.bf16.mxu0 (!%p214_p2), %v1524_v3  ;;  %v1695_v38 = vpack.c.bf16 (!%p214_p2), %v324_v30, %v321_v29  ;;  %v330_v40 = vand.u32 (!%p214_p2), 4294901760, %v1683_v33  ;;  %v1714_v44 = vsub.f32 (!%p214_p2), %v1574_v2, %v303_v7  ;;  %v1719_v45 = vsub.f32 (!%p214_p2), %v1581_v6, %v306_v8 }
   0xc   : > { %v333_v46 = vand.u32 (!%p214_p2), 4294901760, %v1702_v41  ;;  %v336_v49 = vand.u32 (!%p214_p2), 4294901760, %v1709_v42  ;;  %v390_v52 = vand.u32 (!%p214_p2), 4294901760, %v1685_v35  ;;  %v397_v53 = vand.u32 (!%p214_p2), 4294901760, %v1687_v37 }
   0xd   : > { %s1948_s19 = smov (!%p251_p3, %s1028_s19), 1  ;;  %v1730_v48 = vpack.c.bf16 %v330_v40, %v327_v39  ;;  %v1753_v55 = vsub.f32 %v1588_v9, %v309_v14  ;;  %v1758_v56 = vsub.f32 %v1593_v10, %v312_v15  ;;  %v339_v57 = vand.u32 4294901760, %v1736_v50 }
   0xe   : > { %s1623_s11 = sshll.u32 %s1948_s19, 3  ;;  %1357 = vmatpush3.bf16.msra.mxu1 %v1607_v13  ;;  %1429 = vmatpush3.bf16.msra.mxu0 %v1607_v13  ;;  %v342_v58 = vand.u32 4294901760, %v1741_v51  ;;  %v404_v60 = vand.u32 4294901760, %v1714_v44  ;;  %v1770_v61 = vpack.c.bf16 %v336_v49, %v333_v46  ;;  %v391_v62 = vsub.f32 %v1685_v35, %v390_v52 }
   0xf   : > { %s254_s14 = scalar_lea.vmem %s1942_s1, %s1623_s11  ;;  %s258_s17 = scalar_lea.vmem %s1943_s2, %s1623_s11  ;;  %1358 = vmatprep.subr.bf16.mxu1 %v1524_v3  ;;  %1430 = vmatprep.subr.bf16.mxu0 %v1524_v3  ;;  %v398_v63 = vsub.f32 %v1687_v37, %v397_v53  ;;  %v411_v0 = vand.u32 4294901760, %v1719_v45  ;;  %v1780_v1 = vsub.f32 %v1616_v16, %v315_v19  ;;  %v1785_v2 = vsub.f32 %v1621_v17, %v318_v20 }
  0x10   : > { %s262_s21 = scalar_lea.vmem %s1944_s3, %s1623_s11  ;;  %v271_v21 = vld [vmem:[%s254_s14] sm:$0xff]  ;;  %s266_s28 = scalar_lea.vmem %s1945_s4, %s1623_s11  ;;  %v405_v5 = vsub.f32 %v1714_v44, %v404_v60  ;;  %v418_v6 = vand.u32 4294901760, %v1753_v55  ;;  %v425_v7 = vand.u32 4294901760, %v1758_v56  ;;  %v1797_v8 = vpack.c.bf16 %v342_v58, %v339_v57 }
  0x11   : > { %v272_v22 = vld [vmem:[%s258_s17] sm:$0xff]  ;;  %v392_v9 = vand.u32 4294901760, %v391_v62  ;;  %v399_v10 = vand.u32 4294901760, %v398_v63  ;;  %v412_v14 = vsub.f32 %v1719_v45, %v411_v0  ;;  %v1805_v15 = vsub.f32 %v1652_v23, %v321_v29  ;;  %s270_s20 = scalar_lea.vmem %s1946_s5, %s1623_s11 }
  0x12   : > { %v275_v25 = vsub.f32 %v271_v21, %v272_v22  ;;  %v273_v26 = vld [vmem:[%s262_s21] sm:$0xff]  ;;  %1360 = vmatpush3.bf16.msra.mxu1 %v1639_v18  ;;  %1432 = vmatpush3.bf16.msra.mxu0 %v1639_v18  ;;  %v1810_v16 = vsub.f32 %v1657_v24, %v324_v30  ;;  %v1449_v17 = vpack.c.bf16 %v397_v53, %v390_v52  ;;  %v406_v20 = vand.u32 4294901760, %v405_v5 }
  0x13   : > { %v274_v31 = vld [vmem:[%s266_s28] sm:$0xff]  ;;  %1361 = vmatprep.subr.bf16.mxu1 %v1524_v3  ;;  %1433 = vmatprep.subr.bf16.mxu0 %v1524_v3  ;;  %v419_v21 = vsub.f32 %v1753_v55, %v418_v6  ;;  %v426_v22 = vsub.f32 %v1758_v56, %v425_v7  ;;  %v432_v23 = vand.u32 4294901760, %v1780_v1  ;;  %v1823_v24 = vsub.f32 %v1678_v32, %v327_v39 }
  0x14   : > { %v276_v27 = vand.u32 2147483647, %v275_v25  ;;  %v1377_v25 = vpack.c.bf16 %v399_v10, %v392_v9  ;;  %v1828_v29 = vsub.f32 %v1683_v33, %v330_v40  ;;  %v1452_v30 = vpack.c.bf16 %v411_v0, %v404_v60 }
  0x15   : > { %v433_v52 = vsub.f32 %v1780_v1, %v432_v23  ;;  %v453_v39 = vand.u32 4294901760, %v1810_v16  ;;  %v1839_v33 = vsub.f32 %v1702_v41, %v333_v46  ;;  %v1844_v40 = vsub.f32 %v1709_v42, %v336_v49 }
  0x16   : > { %v277_v34 = vmul.f32 %v276_v27, %v273_v26  ;;  %1363 = vmatpush3.bf16.msra.mxu1 %v1669_v28  ;;  %1435 = vmatpush3.bf16.msra.mxu0 %v1669_v28  ;;  %v413_v26 = vand.u32 4294901760, %v412_v14  ;;  %v1455_v53 = vpack.c.bf16 %v425_v7, %v418_v6  ;;  %v460_v60 = vand.u32 4294901760, %v1823_v24 }
  0x17   : > { %1364 = vmatprep.subr.bf16.mxu1 %v1524_v3  ;;  %1436 = vmatprep.subr.bf16.mxu0 %v1524_v3  ;;  %v467_v62 = vand.u32 4294901760, %v1828_v29  ;;  %v434_v46 = vand.u32 4294901760, %v433_v52  ;;  %v454_v42 = vsub.f32 %v1810_v16, %v453_v39  ;;  %v1859_v49 = vsub.f32 %v1736_v50, %v339_v57 }
  0x18   : > { %v278_v36 = vadd.f32 %v277_v34, %v274_v31  ;;  %v420_v31 = vand.u32 4294901760, %v419_v21  ;;  %v427_v34 = vand.u32 4294901760, %v426_v22  ;;  %v1864_v0 = vsub.f32 %v1741_v51, %v342_v58 }
  0x19   : > { %v461_v6 = vsub.f32 %v1823_v24, %v460_v60  ;;  %v468_v7 = vsub.f32 %v1828_v29, %v467_v62  ;;  %v455_v10 = vand.u32 4294901760, %v454_v42  ;;  %v474_v14 = vand.u32 4294901760, %v1839_v33 }
  0x1a   : > { %v279_v43 = vmul.f32 %v278_v36, %v276_v27  ;;  %1366 = vmatpush3.bf16.msra.mxu1 %v1695_v38  ;;  %1438 = vmatpush3.bf16.msra.mxu0 %v1695_v38  ;;  %v439_v27 = vand.u32 4294901760, %v1785_v2  ;;  %v446_v36 = vand.u32 4294901760, %v1805_v15  ;;  %v1383_v41 = vpack.c.bf16 %v427_v34, %v420_v31 }
  0x1b   : > { %1367 = vmatprep.subr.bf16.mxu1 %v1524_v3  ;;  %1439 = vmatprep.subr.bf16.mxu0 %v1524_v3  ;;  %v481_v50 = vand.u32 4294901760, %v1844_v40  ;;  %v462_v57 = vand.u32 4294901760, %v461_v6  ;;  %v469_v58 = vand.u32 4294901760, %v468_v7  ;;  %v495_v22 = vand.u32 4294901760, %v1864_v0 }
  0x1c   : > { %v1722_v47 = vand.u32 4294901760, %v279_v43  ;;  %v440_v32 = vsub.f32 %v1785_v2, %v439_v27  ;;  %v1461_v51 = vpack.c.bf16 %v453_v39, %v446_v36  ;;  %vm937_vm1 = vcmask 31744  }
  0x1d   : > { %v482_v21 = vsub.f32 %v1844_v40, %v481_v50  ;;  %v496_v31 = vsub.f32 %v1864_v0, %v495_v22 }
  0x1e   : > { %v1748_v54 = vsub.f32 %v279_v43, %v1722_v47  ;;  %1369 = vmatpush3.bf16.msra.mxu1 %v1730_v48  ;;  %1441 = vmatpush3.bf16.msra.mxu0 %v1730_v48  ;;  %v1380_v43 = vpack.c.bf16 %v413_v26, %v406_v20  ;;  %v441_v63 = vand.u32 4294901760, %v440_v32  ;;  %v475_v20 = vsub.f32 %v1839_v33, %v474_v14 }
  0x1f   : > { %1370 = vmatprep.subr.bf16.mxu1 %v1524_v3  ;;  %1442 = vmatprep.subr.bf16.mxu0 %v1524_v3  ;;  %v1464_v26 = vpack.c.bf16 %v467_v62, %v460_v60  ;;  %v497_v52 = vand.u32 4294901760, %v496_v31 }
  0x20   : > { %v379_v59 = vand.u32 4294901760, %v1748_v54  ;;  %v1386_v9 = vpack.c.bf16 %v441_v63, %v434_v46 }
  0x22   : > { %v380_v4 = vsub.f32 %v1748_v54, %v379_v59  ;;  %1372 = vmatpush3.bf16.msra.mxu1 %v1770_v61  ;;  %1444 = vmatpush3.bf16.msra.mxu0 %v1770_v61 }
  0x23   : > { %1373 = vmatprep.subr.bf16.mxu1 %v1524_v3  ;;  %1445 = vmatprep.subr.bf16.mxu0 %v1524_v3 }
  0x24   : > { %v381_v19 = vand.u32 4294901760, %v380_v4  ;;  %v1458_v4 = vpack.c.bf16 %v439_v27, %v432_v23  ;;  %v476_v23 = vand.u32 4294901760, %v475_v20  ;;  %v483_v27 = vand.u32 4294901760, %v482_v21 }
  0x26   : > { %1375 = vmatpush3.bf16.msra.mxu1 %v1797_v8  ;;  %1447 = vmatpush3.bf16.msra.mxu0 %v1797_v8  ;;  %v1395_v34 = vpack.c.bf16 %v483_v27, %v476_v23 }
  0x27   : > { %1376 = vmatprep.subr.bf16.mxu1 %v1524_v3  ;;  %1448 = vmatprep.subr.bf16.mxu0 %v1524_v3 }
  0x29   : > { %1175 = vmatmul.mubr.f32.vlgmr.msra.gmra.mrb[0].mxu1 %v381_v19  ;;  %1280 = vmatmul.mubr.f32.vlgmr.msra.gmra.mrb[0].mxu0 %v379_v59  ;;  %v447_v59 = vsub.f32 %v1805_v15, %v446_v36  ;;  %v1467_v36 = vpack.c.bf16 %v481_v50, %v474_v14 }
  0x2a   : > { %1378 = vmatpush3.bf16.msra.mxu1 %v1377_v25  ;;  %1450 = vmatpush3.bf16.msra.mxu0 %v1449_v17  ;;  %v488_v17 = vand.u32 4294901760, %v1859_v49  ;;  %v1392_v25 = vpack.c.bf16 %v469_v58, %v462_v57 }
  0x2b   : > { %1379 = vmatprep.subr.bf16.mxu1 %v1524_v3  ;;  %1451 = vmatprep.subr.bf16.mxu0 %v1524_v3  ;;  %v448_v5 = vand.u32 4294901760, %v447_v59  ;;  %v1404_v59 = vpack.c.bf16 %v1719_v45, %v1714_v44 }
  0x2c   : > { %1209 = vmatprep.mubr.msk.f32.mxu1 %vm1525_vm0, %v1526_v11  ;;  %1314 = vmatprep.mubr.msk.f32.mxu0 %vm1525_vm0, %v1526_v11  ;;  %v1470_v39 = vpack.c.bf16 %v495_v22, %v488_v17 }
  0x2d   : > { %v1389_v19 = vpack.c.bf16 %v455_v10, %v448_v5 }
  0x2e   : > { %1381 = vmatpush3.bf16.msra.mxu1 %v1380_v43  ;;  %1453 = vmatpush3.bf16.msra.mxu0 %v1452_v30  ;;  %v489_v30 = vsub.f32 %v1859_v49, %v488_v17 }
  0x2f   : > { %1382 = vmatprep.subr.bf16.mxu1 %v1524_v3  ;;  %1454 = vmatprep.subr.bf16.mxu0 %v1524_v3 }
  0x30   : > { %v490_v43 = vand.u32 4294901760, %v489_v30 }
  0x32   : > { %1384 = vmatpush3.bf16.msra.mxu1 %v1383_v41  ;;  %1456 = vmatpush3.bf16.msra.mxu0 %v1455_v53  ;;  %v1398_v32 = vpack.c.bf16 %v497_v52, %v490_v43  ;;  %v1401_v53 = vpack.c.bf16 %v1687_v37, %v1685_v35  ;;  %v1407_v35 = vpack.c.bf16 %v1758_v56, %v1753_v55 }
  0x33   : > { %1385 = vmatprep.subr.bf16.mxu1 %v1524_v3  ;;  %1457 = vmatprep.subr.bf16.mxu0 %v1524_v3 }
  0x36   : > { %1387 = vmatpush3.bf16.msra.mxu1 %v1386_v9  ;;  %1459 = vmatpush3.bf16.msra.mxu0 %v1458_v4 }
  0x37   : > { %1388 = vmatprep.subr.bf16.mxu1 %v1524_v3  ;;  %1460 = vmatprep.subr.bf16.mxu0 %v1524_v3 }
  0x3a   : > { %1390 = vmatpush3.bf16.msra.mxu1 %v1389_v19  ;;  %1462 = vmatpush3.bf16.msra.mxu0 %v1461_v51 }
  0x3b   : > { %1391 = vmatprep.subr.bf16.mxu1 %v1524_v3  ;;  %1463 = vmatprep.subr.bf16.mxu0 %v1524_v3 }
  0x3e   : > { %1393 = vmatpush3.bf16.msra.mxu1 %v1392_v25  ;;  %1465 = vmatpush3.bf16.msra.mxu0 %v1464_v26 }
  0x3f   : > { %1394 = vmatprep.subr.bf16.mxu1 %v1524_v3  ;;  %1466 = vmatprep.subr.bf16.mxu0 %v1524_v3 }
  0x42   : > { %1396 = vmatpush3.bf16.msra.mxu1 %v1395_v34  ;;  %1468 = vmatpush3.bf16.msra.mxu0 %v1467_v36 }
  0x43   : > { %1397 = vmatprep.subr.bf16.mxu1 %v1524_v3  ;;  %1469 = vmatprep.subr.bf16.mxu0 %v1524_v3 }
  0x46   : > { %1399 = vmatpush3.bf16.msra.mxu1 %v1398_v32  ;;  %1471 = vmatpush3.bf16.msra.mxu0 %v1470_v39 }
  0x47   : > { %1400 = vmatprep.subr.bf16.mxu1 %v1524_v3  ;;  %1472 = vmatprep.subr.bf16.mxu0 %v1524_v3 }
  0x49   : > { %1210 = vmatmul.mubr.f32.vlgmr.msra.gmra.mrb[0].mxu1 %v1722_v47  ;;  %1315 = vmatmul.mubr.f32.vlgmr.msra.gmra.mrb[0].mxu0 %v1722_v47 }
  0x4a   : > { %1402 = vmatpush3.bf16.msra.mxu1 %v1401_v53  ;;  %1474 = vmatpush3.bf16.msra.mxu0 %v1599_v12  ;;  %v1410_v12 = vpack.c.bf16 %v1785_v2, %v1780_v1 }
  0x4b   : > { %1403 = vmatprep.subr.bf16.mxu1 %v1524_v3  ;;  %1475 = vmatprep.subr.bf16.mxu0 %v1524_v3 }
  0x4c   : > { %1244 = vmatprep.mubr.msk.f32.mxu1 %vm1525_vm0, %v1526_v11  ;;  %1349 = vmatprep.mubr.msk.f32.mxu0 %vm1525_vm0, %v1526_v11  ;;  %v1413_v11 = vpack.c.bf16 %v1810_v16, %v1805_v15 }
  0x4e   : > { %1405 = vmatpush3.bf16.msra.mxu1 %v1404_v59  ;;  %1477 = vmatpush3.bf16.msra.mxu0 %v1607_v13  ;;  %v1416_v13 = vpack.c.bf16 %v1828_v29, %v1823_v24 }
  0x4f   : > { %1406 = vmatprep.subr.bf16.mxu1 %v1524_v3  ;;  %1478 = vmatprep.subr.bf16.mxu0 %v1524_v3 }
  0x52   : > { %1408 = vmatpush3.bf16.msra.mxu1 %v1407_v35  ;;  %1480 = vmatpush3.bf16.msra.mxu0 %v1639_v18  ;;  %v1419_v18 = vpack.c.bf16 %v1844_v40, %v1839_v33 }
  0x53   : > { %1409 = vmatprep.subr.bf16.mxu1 %v1524_v3  ;;  %1481 = vmatprep.subr.bf16.mxu0 %v1524_v3 }
  0x56   : > { %1411 = vmatpush3.bf16.msra.mxu1 %v1410_v12  ;;  %1483 = vmatpush3.bf16.msra.mxu0 %v1669_v28  ;;  %v1422_v28 = vpack.c.bf16 %v1864_v0, %v1859_v49 }
  0x57   : > { %1412 = vmatprep.subr.bf16.mxu1 %v1524_v3  ;;  %1484 = vmatprep.subr.bf16.mxu0 %v1524_v3 }
  0x5a   : > { %1414 = vmatpush3.bf16.msra.mxu1 %v1413_v11  ;;  %1486 = vmatpush3.bf16.msra.mxu0 %v1695_v38 }
  0x5b   : > { %1415 = vmatprep.subr.bf16.mxu1 %v1524_v3  ;;  %1487 = vmatprep.subr.bf16.mxu0 %v1524_v3 }
  0x5e   : > { %1417 = vmatpush3.bf16.msra.mxu1 %v1416_v13  ;;  %1489 = vmatpush3.bf16.msra.mxu0 %v1730_v48 }
  0x5f   : > { %1418 = vmatprep.subr.bf16.mxu1 %v1524_v3  ;;  %1490 = vmatprep.subr.bf16.mxu0 %v1524_v3 }
  0x62   : > { %1420 = vmatpush3.bf16.msra.mxu1 %v1419_v18  ;;  %1492 = vmatpush3.bf16.msra.mxu0 %v1770_v61 }
  0x63   : > { %1421 = vmatprep.subr.bf16.mxu1 %v1524_v3  ;;  %1493 = vmatprep.subr.bf16.mxu0 %v1524_v3 }
  0x66   : > { %1423 = vmatpush3.bf16.msra.mxu1 %v1422_v28  ;;  %1495 = vmatpush3.bf16.msra.mxu0 %v1797_v8 }
  0x69   : > { %1245 = vmatmul.mubr.f32.vlgmr.msra.gmra.mrb[0].mxu1 %v1748_v54  ;;  %1350 = vmatmul.mubr.f32.vlgmr.msra.gmra.mrb[0].mxu0 %v1722_v47 }
 0x13c   : > { %v638_v37 = vpop.f32.mrb[0].mxu1  ;;  %v933_v38 = vpop.f32.mrb[0].mxu0 }
 0x13d   : > { %v1496_v44 = vadd.f32 %v933_v38, %v638_v37  ;;  %v1246_v45 = vpop.f32.mrb[1].mxu1  ;;  %v1351_v48 = vpop.f32.mrb[1].mxu0 }
 0x13f   : > { %938 = vst.msk [vmem:[%s270_s20] sm:$0xff] %vm937_vm1, %v1496_v44 }
 0x140 PF: > { %s15_s18 = sadd.s32 1, %s1522_s18  }
 0x141   : > { %p12_p4 = scmp.ge.s32.totalorder %s15_s18, 4  }
 0x143   :  { %14 = sbr.rel (!%p12_p4) target bundleno = 1 (0x1), region = 79 }

</bundles_post_ra>
